<compile_context>
chip_gen: v7x
topology: tpu7x:2x2x1
jax: 0.10.0
libtpu: 0.0.40
codegen_flags: <defaults>
</compile_context>

<pallas_src>
import functools

import jax
import jax.numpy as jnp
from jax.experimental import pallas as pl
from jax.experimental.pallas import tpu as pltpu


# ----------------------------- hardware helpers ------------------------------


def _vmem_budget_bytes():
    """Conservative per-kernel VMEM budget for the current TPU generation."""
    try:
        info = pltpu.get_tpu_info()
        for name in ("vmem_capacity_bytes", "vmem_bytes", "vmem_size_bytes"):
            cap = getattr(info, name, None)
            if cap:
                return int(cap) * 3 // 4       # headroom for compiler scratch
    except Exception:
        pass
    return 48 << 20                             # safe even on v7x (64 MiB VMEM)


def _num_tensorcores():
    """Best-effort TensorCore-per-chip count (2 on v7x, 1 on v5e/v6e)."""
    try:
        info = pltpu.get_tpu_info()
        for name in ("num_cores", "num_tensorcores", "cores_per_chip",
                     "core_count"):
            v = getattr(info, name, None)
            if v:
                return int(v)
    except Exception:
        pass
    try:
        v = getattr(jax.devices()[0], "num_cores", None)
        if v:
            return int(v)
    except Exception:
        pass
    return 1


def _tile_cap_bytes(budget):
    # ~12 MiB tiles on 128 MiB parts (v5e/v6e), ~6 MiB on v7x (64 MiB VMEM).
    return max(1 << 20, min(budget // 8, 16 << 20))


def _pick_tile(n, unit, bytes_per_unit, cap_bytes):
    """Largest multiple of `unit` dividing n whose tile fits `cap_bytes`.
    Returns n itself (full extent, always a legal block) when n % unit != 0."""
    if n % unit != 0:
        return n
    m_max = min(n // unit, max(1, cap_bytes // max(1, unit * bytes_per_unit)))
    for m in range(m_max, 0, -1):
        t = unit * m
        if n % t == 0:
            return t
    return unit


# ----------------------------- fused kernel ---------------------------------


def _drelu_fused_kernel(x_ref, w1t_ref, b1_ref, w2_ref, b2_ref, lam_ref,
                        init_ref, o_ref, *, k, inv_hw):
    """One batch per grid step: spatial mean -> tiny MLP -> max_j(x*a_j + b_j).

    x_ref / o_ref : (1, C, HW)   VMEM, native dtype
    w1t_ref       : (C, hidden)  VMEM f32 (= W1.T)
    b1_ref        : (1, hidden)  VMEM f32
    w2_ref        : (2k, hidden) VMEM f32
    b2/lam/init   : (2k, 1)      VMEM f32
    """
    x = x_ref[0]                                               # (C, HW), native

    # Per-channel spatial mean, f32 accumulation via the reduce's accumulator
    # dtype (no full-slab f32 copy of x is materialized for bf16 inputs).
    mean_col = jnp.sum(x, axis=-1, keepdims=True,
                       dtype=jnp.float32) * inv_hw             # (C, 1)

    # Tiny coefficient MLP on the VPU (parameter-scale; MXU not worth it here).
    h = jnp.sum(w1t_ref[...] * mean_col, axis=0, keepdims=True) + b1_ref[...]
    h = jnp.maximum(h, 0.0)                                    # (1, hidden)
    t = jnp.sum(w2_ref[...] * h, axis=-1, keepdims=True) + b2_ref[...]
    sig = 1.0 / (1.0 + jnp.exp(-t))                            # EUP
    coefs = (2.0 * sig - 1.0) * lam_ref[...] + init_ref[...]   # (2k, 1) f32

    # Apply in the input dtype (bf16 VALU on v6e/v7x); the (1, 1) coefficient
    # operand is broadcast by the VPU — no materialized (2k, HW) temp.
    c = coefs.astype(x.dtype)
    out = x * c[0:1, 0:1] + c[k:k + 1, 0:1]
    for j in range(1, k):
        out = jnp.maximum(out, x * c[j:j + 1, 0:1] + c[k + j:k + j + 1, 0:1])
    o_ref[0] = out.astype(o_ref.dtype)


def _drelu_fused(x3, params, *, k, vmem_limit, donate_input=False):
    """x3: (B, C, HW). Fully fused DReLU, one batch per grid step."""
    B, C, HW = x3.shape
    hidden = params["W1"].shape[0]

    w1t = params["W1"].T.astype(jnp.float32)                   # (C, hidden)
    b1r = params["b1"].reshape(1, hidden).astype(jnp.float32)
    w2 = params["W2"].astype(jnp.float32)                      # (2k, hidden)
    b2c = params["b2"].reshape(2 * k, 1).astype(jnp.float32)
    lam = params["lambdas"].reshape(2 * k, 1).astype(jnp.float32)
    ini = params["init_v"].reshape(2 * k, 1).astype(jnp.float32)

    kern = functools.partial(_drelu_fused_kernel, k=k, inv_hw=1.0 / HW)
    return pl.pallas_call(
        kern,
        out_shape=jax.ShapeDtypeStruct((B, C, HW), x3.dtype),
        grid=(B,),
        in_specs=[
            pl.BlockSpec((1, C, HW), lambda b: (b, 0, 0)),
            pl.BlockSpec((C, hidden), lambda b: (0, 0)),
            pl.BlockSpec((1, hidden), lambda b: (0, 0)),
            pl.BlockSpec((2 * k, hidden), lambda b: (0, 0)),
            pl.BlockSpec((2 * k, 1), lambda b: (0, 0)),
            pl.BlockSpec((2 * k, 1), lambda b: (0, 0)),
            pl.BlockSpec((2 * k, 1), lambda b: (0, 0)),
        ],
        out_specs=pl.BlockSpec((1, C, HW), lambda b: (b, 0, 0)),
        # x3 is input 0 / output 0 (same shape+dtype); aliasing writes the
        # result in place when the caller no longer needs x (opt-in only).
        input_output_aliases=({0: 0} if donate_input else {}),
        compiler_params=pltpu.CompilerParams(
            dimension_semantics=("parallel",),
            vmem_limit_bytes=int(vmem_limit)),
    )(x3, w1t, b1r, w2, b2c, lam, ini)


# ------------------- two-pass fallback (oversized / unaligned) ---------------


def _mean_kernel(x_ref, sum_ref, *, inv_hw):
    """Accumulate per-channel spatial sums over HW tiles; scale on last step."""
    s = pl.program_id(1)

    @pl.when(s == 0)
    def _():
        sum_ref[...] = jnp.zeros_like(sum_ref)

    sum_ref[...] += jnp.sum(x_ref[...], axis=-1, keepdims=True,
                            dtype=jnp.float32)

    @pl.when(s == pl.num_programs(1) - 1)
    def _():
        sum_ref[...] = sum_ref[...] * inv_hw


def _spatial_mean(x3, *, budget):
    """x3: (B, C, HW) -> (B, C) f32 mean over the spatial axis."""
    B, C, HW = x3.shape
    cap = _tile_cap_bytes(budget)
    tile_hw = _pick_tile(HW, 128, C * x3.dtype.itemsize, cap)
    kern = functools.partial(_mean_kernel, inv_hw=1.0 / HW)
    out = pl.pallas_call(
        kern,
        out_shape=jax.ShapeDtypeStruct((B, C, 1), jnp.float32),
        grid=(B, HW // tile_hw),
        in_specs=[pl.BlockSpec((1, C, tile_hw), lambda b, s: (b, 0, s))],
        out_specs=pl.BlockSpec((1, C, 1), lambda b, s: (b, 0, 0)),
        compiler_params=pltpu.CompilerParams(
            dimension_semantics=("parallel", "arbitrary"),
            vmem_limit_bytes=int(budget)),
    )(x3)
    return out.reshape(B, C)


def _apply_kernel(coef_ref, x_ref, o_ref, *, k):
    """coef_ref: (1, 1, 2k) f32; x/o: (1, 1, tile_n) native dtype."""
    x = x_ref[...]
    c = coef_ref[...].astype(x.dtype)
    out = x * c[:, :, 0:1] + c[:, :, k:k + 1]
    for j in range(1, k):
        out = jnp.maximum(out, x * c[:, :, j:j + 1] + c[:, :, k + j:k + j + 1])
    o_ref[...] = out


def _drelu_apply_flat(x3, coefs, *, k, budget):
    """x3: (B, C, HW), coefs: (B, 2k) f32.

    The slab is flattened to (B, 1, C*HW) so the output's last dim is a large
    multiple of 128 whenever C*HW is (lane-dense, unmasked stores), even when
    H*W itself is not 128-aligned.
    """
    B, C, HW = x3.shape
    N = C * HW
    cap = _tile_cap_bytes(budget)
    tile_n = _pick_tile(N, 128, x3.dtype.itemsize, cap)
    xf = x3.reshape(B, 1, N)
    cf = coefs.reshape(B, 1, 2 * k).astype(jnp.float32)
    kern = functools.partial(_apply_kernel, k=k)
    out = pl.pallas_call(
        kern,
        out_shape=jax.ShapeDtypeStruct((B, 1, N), x3.dtype),
        grid=(B, N // tile_n),
        in_specs=[
            pl.BlockSpec((1, 1, 2 * k), lambda b, s: (b, 0, 0)),
            pl.BlockSpec((1, 1, tile_n), lambda b, s: (b, 0, s)),
        ],
        out_specs=pl.BlockSpec((1, 1, tile_n), lambda b, s: (b, 0, s)),
        compiler_params=pltpu.CompilerParams(
            dimension_semantics=("parallel", "parallel"),
            vmem_limit_bytes=int(budget)),
    )(cf, xf)
    return out.reshape(B, C, HW)


def _drelu_two_pass(x3, params, *, k, budget):
    means = _spatial_mean(x3, budget=budget)                    # (B, C) f32
    # Coefficient MLP is parameter-scale glue; plain JAX is fine here (the
    # fused path does it in-kernel where it rides along for free).
    h = jnp.maximum(means @ params["W1"].T + params["b1"], 0.0)
    theta = h @ params["W2"].T + params["b2"]
    theta = 2.0 * jax.nn.sigmoid(theta) - 1.0
    coefs = theta * params["lambdas"] + params["init_v"]        # (B, 2k)
    return _drelu_apply_flat(x3, coefs, k=k, budget=budget)


# ------------------------------ DReLU module --------------------------------


def init_drelu_params(key, in_channel, reduction=4, k=2):
    """Deterministic synthetic params matching the nn.Linear shapes."""
    hidden = in_channel // reduction
    k1, k2, k3, k4 = jax.random.split(key, 4)
    return {
        "W1": jax.random.normal(k1, (hidden, in_channel), jnp.float32) * 0.2,
        "b1": jax.random.normal(k2, (hidden,), jnp.float32) * 0.1,
        "W2": jax.random.normal(k3, (2 * k, hidden), jnp.float32) * 0.2,
        "b2": jax.random.normal(k4, (2 * k,), jnp.float32) * 0.1,
        "lambdas": jnp.array([1.0] * k + [0.5] * k, jnp.float32),
        "init_v": jnp.array([1.0] + [0.0] * (2 * k - 1), jnp.float32),
    }


def drelu_forward(x, params, *, k=2, force_two_pass=False, donate_input=False):
    """x: (B, C, H, W) NCHW (f32 or bf16). Returns same shape/dtype."""
    B, C, H, W = x.shape
    HW = H * W
    x3 = x.reshape(B, C, HW)

    budget = _vmem_budget_bytes()
    slab = C * HW * x.dtype.itemsize
    # Fused footprint: double-buffered in+out Pallas buffers (4 slabs) plus
    # headroom for the in-kernel elementwise temporaries (kept in the native
    # dtype now that the apply no longer up-casts the slab to f32).
    fused_need = 8 * slab + (2 << 20)
    lane_dense = (HW % 128 == 0)
    n_tc = _num_tensorcores()

    use_fused = ((not force_two_pass) and lane_dense and fused_need <= budget
                 # v7x: a batch-only grid with B < #TensorCores idles a core;
                 # the spatially tiled two-pass path keeps both busy.
                 and B >= n_tc)

    if use_fused:
        out3 = _drelu_fused(x3, params, k=k,
                            vmem_limit=min(budget, max(fused_need, 32 << 20)),
                            donate_input=donate_input)
    else:
        out3 = _drelu_two_pass(x3, params, k=k, budget=budget)
    return out3.reshape(B, C, H, W)


# ------------------------------- reference ----------------------------------


def drelu_reference(x, params, *, k=2):
    theta = x.mean(axis=-1).mean(axis=-1)                       # (B, C)
    theta = jnp.maximum(theta @ params["W1"].T + params["b1"], 0.0)
    theta = theta @ params["W2"].T + params["b2"]
    theta = 2.0 * jax.nn.sigmoid(theta) - 1.0
    coefs = theta * params["lambdas"] + params["init_v"]        # (B, 2k)
    a = coefs[:, :k].reshape(-1, 1, 1, 1, k)
    b = coefs[:, k:].reshape(-1, 1, 1, 1, k)
    return (x[..., None] * a + b).max(axis=-1)


# --------------------------------- main --------------------------------------

if __name__ == "__main__":
    key = jax.random.PRNGKey(0)
    kx, kx2, kp = jax.random.split(key, 3)

    reduction, k = 4, 2
    B, C = 2, 8
    params = init_drelu_params(kp, C, reduction=reduction, k=k)

    # Lane-dense spatial shape (H*W % 128 == 0) -> fused single-pass path.
    x = jax.random.normal(kx, (B, C, 16, 16), jnp.float32)
    ref = drelu_reference(x, params, k=k)
    out = jax.block_until_ready(drelu_forward(x, params, k=k))
    assert out.shape == x.shape
    assert jnp.allclose(out, ref, atol=1e-4, rtol=1e-4), "fused path mismatch"

    # Two-pass fallback (mean kernel + lane-dense flattened apply kernel).
    out2 = jax.block_until_ready(
        drelu_forward(x, params, k=k, force_two_pass=True))
    assert jnp.allclose(out2, ref, atol=1e-4, rtol=1e-4), "two-pass mismatch"

    # Non-128-aligned H*W (14x14 = 196) routes to the two-pass path with a
    # flattened lane-dense apply slab.
    xu = jax.random.normal(kx2, (B, C, 14, 14), jnp.float32)
    refu = drelu_reference(xu, params, k=k)
    outu = jax.block_until_ready(drelu_forward(xu, params, k=k))
    assert jnp.allclose(outu, refu, atol=1e-4, rtol=1e-4), "unaligned mismatch"

    print("KERNEL_OK")
</pallas_src>

<mosaic_0001>
module attributes {stable_mosaic.version = 11 : i64} {
  func.func @_drelu_fused_kernel(%arg0: i32, %arg1: memref<1x8x256xf32, #tpu.memory_space<vmem>>, %arg2: memref<8x2xf32, #tpu.memory_space<vmem>>, %arg3: memref<1x2xf32, #tpu.memory_space<vmem>>, %arg4: memref<4x2xf32, #tpu.memory_space<vmem>>, %arg5: memref<4x1xf32, #tpu.memory_space<vmem>>, %arg6: memref<4x1xf32, #tpu.memory_space<vmem>>, %arg7: memref<4x1xf32, #tpu.memory_space<vmem>>, %arg8: memref<1x8x256xf32, #tpu.memory_space<vmem>>) attributes {dimension_semantics = [#tpu.dimension_semantics<parallel>], iteration_bounds = array<i64: 2>, scalar_prefetch = 0 : i64, scratch_operands = 0 : i64, tpu.core_type = #tpu.core_type<tc>, window_params = [{transform_indices = @transform_0, window_bounds = array<i64: 1, 8, 256>}, {pipeline_mode = #tpu.pipeline_mode<synchronous>, transform_indices = @transform_1, window_bounds = array<i64: 8, 2>}, {pipeline_mode = #tpu.pipeline_mode<synchronous>, transform_indices = @transform_2, window_bounds = array<i64: 1, 2>}, {pipeline_mode = #tpu.pipeline_mode<synchronous>, transform_indices = @transform_3, window_bounds = array<i64: 4, 2>}, {pipeline_mode = #tpu.pipeline_mode<synchronous>, transform_indices = @transform_4, window_bounds = array<i64: 4, 1>}, {pipeline_mode = #tpu.pipeline_mode<synchronous>, transform_indices = @transform_5, window_bounds = array<i64: 4, 1>}, {pipeline_mode = #tpu.pipeline_mode<synchronous>, transform_indices = @transform_6, window_bounds = array<i64: 4, 1>}, {transform_indices = @transform_7, window_bounds = array<i64: 1, 8, 256>}]} {
    %c0 = arith.constant 0 : index
    %c0_0 = arith.constant 0 : index
    %c0_1 = arith.constant 0 : index
    %0 = vector.load %arg1[%c0, %c0_0, %c0_1] : memref<1x8x256xf32, #tpu.memory_space<vmem>>, vector<1x8x256xf32>
    %1 = vector.shape_cast %0 : vector<1x8x256xf32> to vector<8x256xf32>
    %cst = arith.constant dense<0.000000e+00> : vector<8xf32>
    %2 = vector.multi_reduction <add>, %1, %cst [1] : vector<8x256xf32> to vector<8xf32>
    %3 = vector.shape_cast %2 : vector<8xf32> to vector<8x1xf32>
    %cst_2 = arith.constant 3.906250e-03 : f32
    %4 = vector.broadcast %cst_2 : f32 to vector<8x1xf32>
    %5 = arith.mulf %3, %4 : vector<8x1xf32>
    %c0_3 = arith.constant 0 : index
    %c0_4 = arith.constant 0 : index
    %6 = vector.load %arg2[%c0_3, %c0_4] : memref<8x2xf32, #tpu.memory_space<vmem>>, vector<8x2xf32>
    %7 = vector.broadcast %5 : vector<8x1xf32> to vector<8x2xf32>
    %8 = arith.mulf %6, %7 : vector<8x2xf32>
    %cst_5 = arith.constant dense<0.000000e+00> : vector<2xf32>
    %9 = vector.multi_reduction <add>, %8, %cst_5 [0] : vector<8x2xf32> to vector<2xf32>
    %10 = vector.shape_cast %9 : vector<2xf32> to vector<1x2xf32>
    %c0_6 = arith.constant 0 : index
    %c0_7 = arith.constant 0 : index
    %11 = vector.load %arg3[%c0_6, %c0_7] : memref<1x2xf32, #tpu.memory_space<vmem>>, vector<1x2xf32>
    %12 = arith.addf %10, %11 : vector<1x2xf32>
    %cst_8 = arith.constant 0.000000e+00 : f32
    %13 = vector.broadcast %cst_8 : f32 to vector<1x2xf32>
    %14 = arith.maximumf %12, %13 : vector<1x2xf32>
    %c0_9 = arith.constant 0 : index
    %c0_10 = arith.constant 0 : index
    %15 = vector.load %arg4[%c0_9, %c0_10] : memref<4x2xf32, #tpu.memory_space<vmem>>, vector<4x2xf32>
    %16 = vector.broadcast %14 : vector<1x2xf32> to vector<4x2xf32>
    %17 = arith.mulf %15, %16 : vector<4x2xf32>
    %cst_11 = arith.constant dense<0.000000e+00> : vector<4xf32>
    %18 = vector.multi_reduction <add>, %17, %cst_11 [1] : vector<4x2xf32> to vector<4xf32>
    %19 = vector.shape_cast %18 : vector<4xf32> to vector<4x1xf32>
    %c0_12 = arith.constant 0 : index
    %c0_13 = arith.constant 0 : index
    %20 = vector.load %arg5[%c0_12, %c0_13] : memref<4x1xf32, #tpu.memory_space<vmem>>, vector<4x1xf32>
    %21 = arith.addf %19, %20 : vector<4x1xf32>
    %cst_14 = arith.constant 0.000000e+00 : f32
    %22 = vector.broadcast %cst_14 : f32 to vector<4x1xf32>
    %23 = arith.subf %22, %21 : vector<4x1xf32>
    %24 = math.exp %23 : vector<4x1xf32>
    %cst_15 = arith.constant 1.000000e+00 : f32
    %25 = vector.broadcast %cst_15 : f32 to vector<4x1xf32>
    %26 = arith.addf %25, %24 : vector<4x1xf32>
    %cst_16 = arith.constant 1.000000e+00 : f32
    %27 = vector.broadcast %cst_16 : f32 to vector<4x1xf32>
    %28 = arith.divf %27, %26 : vector<4x1xf32>
    %cst_17 = arith.constant 2.000000e+00 : f32
    %29 = vector.broadcast %cst_17 : f32 to vector<4x1xf32>
    %30 = arith.mulf %29, %28 : vector<4x1xf32>
    %cst_18 = arith.constant 1.000000e+00 : f32
    %31 = vector.broadcast %cst_18 : f32 to vector<4x1xf32>
    %32 = arith.subf %30, %31 : vector<4x1xf32>
    %c0_19 = arith.constant 0 : index
    %c0_20 = arith.constant 0 : index
    %33 = vector.load %arg6[%c0_19, %c0_20] : memref<4x1xf32, #tpu.memory_space<vmem>>, vector<4x1xf32>
    %34 = arith.mulf %32, %33 : vector<4x1xf32>
    %c0_21 = arith.constant 0 : index
    %c0_22 = arith.constant 0 : index
    %35 = vector.load %arg7[%c0_21, %c0_22] : memref<4x1xf32, #tpu.memory_space<vmem>>, vector<4x1xf32>
    %36 = arith.addf %34, %35 : vector<4x1xf32>
    %37 = vector.extract_strided_slice %36 {offsets = [0, 0], sizes = [1, 1], strides = [1, 1]} : vector<4x1xf32> to vector<1x1xf32>
    %38 = vector.broadcast %37 : vector<1x1xf32> to vector<8x256xf32>
    %39 = arith.mulf %1, %38 : vector<8x256xf32>
    %40 = vector.extract_strided_slice %36 {offsets = [2, 0], sizes = [1, 1], strides = [1, 1]} : vector<4x1xf32> to vector<1x1xf32>
    %41 = vector.broadcast %40 : vector<1x1xf32> to vector<8x256xf32>
    %42 = arith.addf %39, %41 : vector<8x256xf32>
    %43 = vector.extract_strided_slice %36 {offsets = [1, 0], sizes = [1, 1], strides = [1, 1]} : vector<4x1xf32> to vector<1x1xf32>
    %44 = vector.broadcast %43 : vector<1x1xf32> to vector<8x256xf32>
    %45 = arith.mulf %1, %44 : vector<8x256xf32>
    %46 = vector.extract_strided_slice %36 {offsets = [3, 0], sizes = [1, 1], strides = [1, 1]} : vector<4x1xf32> to vector<1x1xf32>
    %47 = vector.broadcast %46 : vector<1x1xf32> to vector<8x256xf32>
    %48 = arith.addf %45, %47 : vector<8x256xf32>
    %49 = arith.maximumf %42, %48 : vector<8x256xf32>
    %c0_23 = arith.constant 0 : index
    %c0_24 = arith.constant 0 : index
    %c0_25 = arith.constant 0 : index
    %50 = vector.load %arg8[%c0_23, %c0_24, %c0_25] : memref<1x8x256xf32, #tpu.memory_space<vmem>>, vector<1x8x256xf32>
    %51 = vector.shape_cast %50 : vector<1x8x256xf32> to vector<8x256xf32>
    %52 = vector.shape_cast %49 : vector<8x256xf32> to vector<1x8x256xf32>
    tpu.vector_store %arg8[%c0_23, %c0_24, %c0_25], %52 {strides = array<i32>} : memref<1x8x256xf32, #tpu.memory_space<vmem>>, vector<1x8x256xf32>,
    return
  }
  func.func @transform_0(%arg0: i32) -> (i32, i32, i32) {
    %c0_i32 = arith.constant 0 : i32
    %c0_i32_0 = arith.constant 0 : i32
    %c0_i32_1 = arith.constant 0 : i32
    return %arg0, %c0_i32, %c0_i32_0 : i32, i32, i32
  }
  func.func @transform_1(%arg0: i32) -> (i32, i32) {
    %c0_i32 = arith.constant 0 : i32
    %c0_i32_0 = arith.constant 0 : i32
    %c0_i32_1 = arith.constant 0 : i32
    return %c0_i32, %c0_i32_0 : i32, i32
  }
  func.func @transform_2(%arg0: i32) -> (i32, i32) {
    %c0_i32 = arith.constant 0 : i32
    %c0_i32_0 = arith.constant 0 : i32
    %c0_i32_1 = arith.constant 0 : i32
    return %c0_i32, %c0_i32_0 : i32, i32
  }
  func.func @transform_3(%arg0: i32) -> (i32, i32) {
    %c0_i32 = arith.constant 0 : i32
    %c0_i32_0 = arith.constant 0 : i32
    %c0_i32_1 = arith.constant 0 : i32
    return %c0_i32, %c0_i32_0 : i32, i32
  }
  func.func @transform_4(%arg0: i32) -> (i32, i32) {
    %c0_i32 = arith.constant 0 : i32
    %c0_i32_0 = arith.constant 0 : i32
    %c0_i32_1 = arith.constant 0 : i32
    return %c0_i32, %c0_i32_0 : i32, i32
  }
  func.func @transform_5(%arg0: i32) -> (i32, i32) {
    %c0_i32 = arith.constant 0 : i32
    %c0_i32_0 = arith.constant 0 : i32
    %c0_i32_1 = arith.constant 0 : i32
    return %c0_i32, %c0_i32_0 : i32, i32
  }
  func.func @transform_6(%arg0: i32) -> (i32, i32) {
    %c0_i32 = arith.constant 0 : i32
    %c0_i32_0 = arith.constant 0 : i32
    %c0_i32_1 = arith.constant 0 : i32
    return %c0_i32, %c0_i32_0 : i32, i32
  }
  func.func @transform_7(%arg0: i32) -> (i32, i32, i32) {
    %c0_i32 = arith.constant 0 : i32
    %c0_i32_0 = arith.constant 0 : i32
    %c0_i32_1 = arith.constant 0 : i32
    return %arg0, %c0_i32, %c0_i32_0 : i32, i32, i32
  }
}

</mosaic_0001>

<bundles_post_ra>
// kernel: tpu_custom_call.1
= control target key start
LH: loop header
LB: loop body
LE: loop exit
PB: predicated region body
PF: predicated region fallthrough
CT: control target
= control target key end

     0   :  { %12 = vsyncpa [#allocation3], 0  ;;  %s849_s0 = inlined_call_operand.hbm [shape: f32[2,8,256], index: 0, kind: input, shape index: {}]   ;;  %s850_s1 = inlined_call_operand.vmem [shape: f32[8,2], index: 1, kind: input, shape index: {}]   ;;  %s851_s2 = inlined_call_operand.vmem [shape: f32[1,2], index: 2, kind: input, shape index: {}]   ;;  %s852_s3 = inlined_call_operand.vmem [shape: f32[4,2], index: 3, kind: input, shape index: {}]   ;;  %s853_s4 = inlined_call_operand.vmem [shape: f32[4,1], index: 4, kind: input, shape index: {}]   ;;  %s854_s5 = inlined_call_operand.vmem [shape: f32[4,1], index: 5, kind: input, shape index: {}]   ;;  %s855_s6 = inlined_call_operand.vmem [shape: f32[4,1], index: 6, kind: input, shape index: {}]   ;;  %s856_s7 = inlined_call_operand.hbm [shape: f32[2,8,256], index: 7, kind: output, shape index: {}]  }
   0x1   :  { %14 = vsyncpa [#allocation3 + $0x1], 0 }
   0x2   :  { %15 = vsyncpa [#allocation4], 0 }
   0x3   :  { %17 = vsyncpa [#allocation4 + $0x1], 0  ;;  %s666_s24 = smov 0   ;;  %s668_s25 = smov 0  }
   0x4   :  { %s670_s26 = smov 0   ;;  %s672_s27 = smov 0  }
   0x5 LB: > { %s687_s28 = sadd.s32 4294967295, %s622_s27   ;;  %s451_s29 = sadd.s32 4294967294, %s622_s27   ;;  %s622_s27 = sphi %s672_s27, %s871_s27   ;;  %s618_s26 = sphi %s670_s26, %s870_s26   ;;  %s614_s25 = sphi %s668_s25, %s869_s25   ;;  %s610_s24 = sphi %s666_s24, %s868_s24  }
   0x6   : > { %s691_s30 = sadd.s32 1, %s622_s27   ;;  %s30_s8 = sadd.s32 1, %s618_s26 }
   0x7   : > { %s27_s9 = ssub.s32 %s622_s27, %s691_s30  ;;  %p37_p0 = scmp.ne.s32.totalorder %s618_s26, %s614_s25 }
   0x8   : > { %p28_p1 = scmp.eq.s32.totalorder %s27_s9, 0  ;;  %p38_p2 = scmp.eq.s32.totalorder %s622_s27, 0 }
   0x9   : > { %p43_p3 = scmp.ne.s32.totalorder %s614_s25, %s610_s24  ;;  %p44_p4 = scmp.eq.s32.totalorder %s687_s28, 0 }
   0xa   : > { %s703_s10 = scalar_select %p28_p1, %s618_s26, %s30_s8  }
   0xb   : > { %p705_p5 = por %p38_p2, %p37_p0  ;;  %p709_p6 = por %p44_p4, %p43_p3 }
   0xc   : > { %p193_p7 = scmp.eq.s32.totalorder %s687_s28, 1  ;;  %p199_p8 = scmp.eq.s32.totalorder %s451_s29, 1 }
   0xd   : > { %p488_p10 = scmp.lt.s32.totalorder %s622_s27, 2  ;;  %s237_s15 = sand.u32 1, %s618_s26  }
   0xe   : > { %p716_p11 = por %p193_p7, %p37_p0  ;;  %p720_p12 = por %p199_p8, %p43_p3 }
   0xf   : > { %s466_s16 = sshll.u32 %s622_s27, 8  ;;  %s454_s17 = sshll.u32 %s237_s15, 4 }
  0x10   : > { %s860_s13 = scalar_select %p716_p11, 1, 0 }
  0x11   : > { %s861_s14 = scalar_select %p720_p12, 1, 0 }
  0x12   : > { %s729_s20 = scalar_lea.hbm %s849_s0, %s466_s16  ;;  %s241_s21 = scalar_lea.vmem [#allocation2], %s454_s17 }
  0x13   : > { %s249_s22 = sshll.u32 %s241_s21, 4  ;;  %p733_p13 = pnand %p488_p10, %p705_p5  ;;  %s737_s22 = int_to_ptr.vmem [resolvable:$true] %s249_s22 }
  0x14   : > { %s238_s29 = scalar_lea.sflag [#allocation3], %s237_s15  ;;  %s526_s8 = scalar_lea.hbm %s729_s20, 256 }
  0x15   : > { %p527_p2 = scmp.ne.s32.totalorder %s729_s20, %s526_s8  ;;  %p528_p3 = pneg %p733_p13 }
  0x16   : > { %s531_s16 = scalar_lea.hbm %s849_s0, 512  ;;  %p532_p5 = scmp.lt.u32.totalorder %s729_s20, %s849_s0 }
  0x17   : > { %p529_p4 = pnand %p528_p3, %p527_p2  ;;  %p533_p8 = scmp.lt.u32.totalorder %s531_s16, %s526_s8 }
  0x18   : > { %p535_p9 = scmp.lt.u32.totalorder %s526_s8, %s729_s20 }
  0x19   : > { %p530_p7 = pneg %p529_p4  ;;  %p534_p10 = por %p533_p8, %p532_p5 }
  0x1b   : > { %p536_p0 = por %p535_p9, %p534_p10 }
  0x1d   : > { %p537_p1 = pnand %p536_p0, %p530_p7 }
  0x1f   : > { %540 = shalt.err (!%p537_p1)
}
  0x20   : > { %s541_s15 = scalar_lea.vmem %s737_s22, 256  ;;  %s624_s19 = smov [#allocation2]  }
  0x21   : > { %p542_p2 = scmp.ne.s32.totalorder %s737_s22, %s541_s15  ;;  %s546_s21 = sshll.u32 %s624_s19, 4  ;;  %s547_s21 = int_to_ptr.vmem [resolvable:$false] %s546_s21 }
  0x22   : > { %s548_s9 = scalar_lea.vmem %s547_s21, 512  ;;  %p549_p11 = scmp.lt.s32.totalorder %s737_s22, %s547_s21 }
  0x23   : > { %p544_p4 = pnand %p542_p2, %p528_p3  ;;  %p550_p5 = scmp.lt.s32.totalorder %s548_s9, %s541_s15 }
  0x25   : > { %p545_p12 = pneg %p544_p4  ;;  %p551_p8 = por %p550_p5, %p549_p11 }
  0x27   : > { %p552_p9 = pnand %p551_p8, %p545_p12 }
  0x29   : > { %555 = shalt.err (!%p552_p9)
}
  0x2a   : > { %483 = dma.hbm_to_vmem [thread:$0]  (!%p733_p13), %s729_s20, 256, %s737_s22, %s238_s29  }
  0x2b   : > { %p863_p0 = scmp.lt.s32.totalorder %s622_s27, 3  ;;  %p864_p1 = scmp.ge.s32.totalorder %s622_s27, 1 }
  0x2d   : > { %p255_p3 = pnand %p864_p1, %p863_p0 }
  0x2e   : > { %s771_s8 = sand.u32 (!%p255_p3), 1, %s614_s25  }
  0x2f   : > { %258 = sbr.rel (%p255_p3) target bundleno = 480 (0x1e0), region = 48  ;;  %s458_s11 = sshll.u32 (!%p255_p3), %s771_s8, 4 }
  0x30   : > { %s261_s16 = scalar_lea.sflag (!%p255_p3), [#allocation3], %s771_s8  ;;  %s264_s23 = scalar_lea.vmem (!%p255_p3), [#allocation2], %s458_s11 }
  0x36   : > { %601 = dma.done.wait (%p709_p6), %s261_s16, 256  }
  0x37   : > { %603 = vsyncadd (%p709_p6), %s261_s16, 4294967040  ;;  %v295_v0 = vld [vmem:[%s264_s23] sm:$0xff]  ;;  %v296_v1 = vld [vmem:[%s264_s23 + $0x8] sm:$0xff]  ;;  %vm303_vm0 = vcmask 15360   ;;  %v315_v11 = vlaneseq  ;;  %vm320_vm1 = vcmask 11264   ;;  %s467_s17 = sshll.u32 %s687_s28, 8 }
  0x38   : > { %v297_v2 = vadd.f32 %v296_v1, %v295_v0  ;;  %v301_v3 = vld [vmem:[%s850_s1] sm:$0xff]  ;;  %s294_s18 = scalar_lea.vmem [#allocation5], %s458_s11  ;;  %s805_s9 = scalar_lea.hbm %s856_s7, %s467_s17 }
  0x39   : > { %v316_v14 = vshrl.u32 %v315_v11, 7  ;;  %v311_v15 = vld [vmem:[%s851_s2] sm:$0x1]  ;;  %s381_s15 = sshll.u32 %s294_s18, 4  ;;  %s367_s28 = scalar_lea.sflag [#allocation4], %s771_s8  ;;  %s807_s15 = int_to_ptr.vmem [resolvable:$true] %s381_s15 }
  0x3a   : > { %298 = vadd.xlane.f32.xlu0 %v297_v2  ;;  %v314_v20 = vld [vmem:[%s852_s3] sm:$0xf]  ;;  %s556_s11 = scalar_lea.vmem %s807_s15, 256  ;;  %p865_p11 = scmp.ne.s32.totalorder %s860_s13, 0 }
  0x3b   : > { %v317_v18 = vsub.s32 0, %v316_v14  ;;  %v324_v24 = vld [vmem:[%s853_s4] sm:$0xf]  ;;  %p557_p6 = scmp.ne.s32.totalorder %s807_s15, %s556_s11  ;;  %s625_s16 = smov [#allocation5]  }
  0x3c   : > { %v334_v33 = vld [vmem:[%s854_s5] sm:$0xf]  ;;  %s560_s23 = sshll.u32 %s625_s16, 4  ;;  %s561_s23 = int_to_ptr.vmem [resolvable:$false] %s560_s23 }
  0x3d   : > { %v336_v35 = vld [vmem:[%s855_s6] sm:$0xf]  ;;  %p558_p12 = pnand %p557_p6, %p865_p11  ;;  %p563_p7 = scmp.lt.s32.totalorder %s807_s15, %s561_s23 }
  0x3f   : > { %p559_p13 = pneg %p558_p12 }
  0xc7   : > { %v299_v4 = vpop.xlane.xlu0 %298 }
  0xc8   : > { %v300_v5 = vmul.f32 0.00390625, %v299_v4 }
  0xca   : > { %v302_v6 = vmul.f32 %v301_v3, %v300_v5 }
  0xcc   : > { %v304_v7 = vsel %vm303_vm0, %v302_v6, 0.0 }
  0xcd   : > { %v305_v8 = vrot.slane %v304_v7, 4 }
  0xcf   : > { %v306_v9 = vadd.f32 %v305_v8, %v304_v7 }
  0xd1   : > { %v307_v10 = vrot.slane %v306_v9, 2 }
  0xd3   : > { %v308_v12 = vadd.f32 %v307_v10, %v306_v9 }
  0xd5   : > { %v309_v13 = vrot.slane %v308_v12, 1 }
  0xd7   : > { %v310_v16 = vadd.f32 %v309_v13, %v308_v12 }
  0xd9   : > { %v312_v17 = vadd.f32 %v311_v15, %v310_v16 }
  0xdb   : > { %v313_v19 = vmax.f32 %v312_v17, 0.0 }
  0xdd   : > { %v318_v21 = vrot.slane %v313_v19, %v317_v18 }
  0xdf   : > { %v319_v22 = vmul.f32 %v318_v21, %v314_v20 }
  0xe1   : > { %v321_v23 = vsel %vm320_vm1, %v319_v22, 0.0 }
  0xe2   : > { %322 = vadd.xlane.f32.xlu0 %v321_v23 }
 0x16f   : > { %v323_v25 = vpop.xlane.xlu0 %322 }
 0x170   : > { %v325_v26 = vadd.f32 %v324_v24, %v323_v25 }
 0x172   : > { %v326_v27 = vsub.f32 0.0, %v325_v26 }
 0x174   : > { %v327_v28 = vmul.f32 1.442695, %v326_v27 }
 0x176   : > { %522 = vpow2.f32 %v327_v28 }
 0x180   : > { %v523_v29 = vpop.eup %522 }
 0x181   : > { %v329_v30 = vadd.f32 1.0, %v523_v29 }
 0x183   : > { %524 = vrcp.f32 %v329_v30 }
 0x18d   : > { %v525_v31 = vpop.eup %524 }
 0x18e   : > { %v332_v32 = vmul.f32 2.0, %v525_v31 }
 0x190   : > { %v460_v34 = vadd.f32 -1.0, %v332_v32 }
 0x192   : > { %v335_v36 = vmul.f32 %v460_v34, %v334_v33 }
 0x194   : > { %v337_v37 = vadd.f32 %v336_v35, %v335_v36 }
 0x196   : > { %468 = vpush %v337_v37  ;;  %v344_v38 = vrot.slane %v337_v37, 2  ;;  %v350_v39 = vrot.slane %v337_v37, 1  ;;  %v356_v40 = vrot.slane %v337_v37, 3 }
 0x198   : > { %470 = vpush %v344_v38 }
 0x199   : > { %472 = vpush %v350_v39 }
 0x19a   : > { %474 = vpush %v356_v40 }
 0x1c7   : > { %s469_s20 = spop %468 }
 0x1c8   : > { %v340_v41 = vstv %s469_s20  ;;  %s562_s20 = scalar_lea.vmem %s561_s23, 512 }
 0x1c9   : > { %s471_s22 = spop %470  ;;  %v342_v42 = vmul.f32 %v340_v41, %v295_v0  ;;  %v343_v43 = vmul.f32 %v340_v41, %v296_v1  ;;  %p564_p10 = scmp.lt.s32.totalorder %s562_s20, %s556_s11 }
 0x1ca   : > { %s473_s12 = spop %472  ;;  %v346_v44 = vstv %s471_s22 }
 0x1cb   : > { %v352_v45 = vstv %s473_s12  ;;  %s475_s29 = spop %474  ;;  %v348_v49 = vadd.f32 %v346_v44, %v342_v42  ;;  %v349_v50 = vadd.f32 %v346_v44, %v343_v43  ;;  %p565_p2 = por %p564_p10, %p563_p7 }
 0x1cc   : > { %v354_v46 = vmul.f32 %v352_v45, %v295_v0  ;;  %v355_v47 = vmul.f32 %v352_v45, %v296_v1  ;;  %v358_v48 = vstv %s475_s29 }
 0x1cd   : > { %p566_p4 = pnand %p565_p2, %p559_p13 }
 0x1ce   : > { %v360_v51 = vadd.f32 %v358_v48, %v354_v46  ;;  %v361_v52 = vadd.f32 %v358_v48, %v355_v47 }
 0x1d0   : > { %v362_v53 = vmax.f32 %v348_v49, %v360_v51  ;;  %v363_v54 = vmax.f32 %v349_v50, %v361_v52 }
 0x1d2   : > { %364 = vst [vmem:[%s294_s18] sm:$0xff] %v362_v53  ;;  %365 = vst [vmem:[%s294_s18 + $0x8] sm:$0xff] %v363_v54 }
 0x1d3   : > { %569 = shalt.err (!%p566_p4)
}
 0x1d4   : > { %s570_s8 = scalar_lea.hbm %s805_s9, 256  ;;  %s574_s29 = scalar_lea.hbm %s856_s7, 512 }
 0x1d5   : > { %p571_p5 = scmp.ne.s32.totalorder %s805_s9, %s570_s8  ;;  %p575_p0 = scmp.lt.u32.totalorder %s805_s9, %s856_s7 }
 0x1d6   : > { %p576_p1 = scmp.lt.u32.totalorder %s574_s29, %s570_s8  ;;  %p578_p6 = scmp.lt.u32.totalorder %s570_s8, %s805_s9 }
 0x1d7   : > { %p572_p8 = pnand %p571_p5, %p865_p11 }
 0x1d8   : > { %p577_p3 = por %p576_p1, %p575_p0 }
 0x1d9   : > { %p573_p9 = pneg %p572_p8 }
 0x1da   : > { %p579_p12 = por %p578_p6, %p577_p3 }
 0x1dc   : > { %p580_p13 = pnand %p579_p12, %p573_p9 }
 0x1de   : > { %583 = shalt.err (!%p580_p13)
}
 0x1df   : > { %478 = dma.vmem_to_hbm [thread:$0]  (%p865_p11), %s807_s15, 256, %s805_s9, %s367_s28  }
 0x1e0 PF: > { %s393_s19 = sand.u32 1, %s610_s24   ;;  %p866_p7 = scmp.ne.s32.totalorder %s861_s14, 0 }
 0x1e1   : > { %p867_p10 = scmp.ge.s32.totalorder %s622_s27, 2  ;;  %s394_s21 = scalar_lea.sflag [#allocation4], %s393_s19 }
 0x1e3   : > { %p485_p2 = pnand %p867_p10, %p866_p7 }
 0x1e5   : > { %605 = dma.done.wait (!%p485_p2), %s394_s21, 256  }
 0x1e6   : > { %607 = vsyncadd (!%p485_p2), %s394_s21, 4294967040  ;;  %p20_p4 = scmp.ge.s32.totalorder %s691_s30, 4   ;;  %s868_s24 = smov %s614_s25 }
 0x1e7   : > { %s869_s25 = smov %s618_s26  ;;  %s870_s26 = smov %s703_s10 }
 0x1e8   : > { %s871_s27 = smov %s691_s30  ;;  %22 = sbr.rel (!%p20_p4) target bundleno = 5 (0x5), region = 93 }
 0x1ef   :  { %399 = vsyncpa [#allocation3], 1 }
 0x1f0   :  { %401 = vsyncpa [#allocation3 + $0x1], 1 }
 0x1f1   :  { %402 = vsyncpa [#allocation4], 1 }
 0x1f2   :  { %404 = vsyncpa [#allocation4 + $0x1], 1 }

</bundles_post_ra>
